<compile_context>
chip_gen: v7x
topology: tpu7x:2x2x1
jax: 0.10.0
libtpu: 0.0.40
codegen_flags: <defaults>
</compile_context>

<pallas_src>
import functools

import jax
import jax.numpy as jnp
from jax.experimental import pallas as pl
from jax.experimental.pallas import tpu as pltpu

LANE = 128  # vreg lane width: feature dims padded to multiples of this


def _round_up(x, m):
    return ((x + m - 1) // m) * m


def _vmem_limit_bytes():
    """Generation-aware scoped-VMEM budget (~3/4 of physical, capped)."""
    cap = 64 * 1024 * 1024  # conservative fallback = v7x per-TensorCore VMEM
    try:
        info = pltpu.get_tpu_info()
        cap = int(getattr(info, "vmem_capacity_bytes", cap))
    except Exception:
        pass
    return min(100 * 1024 * 1024, (cap * 3) // 4)


def _pick_tiles(n, tm_req, tk_req):
    """Node padding + tile sizes.

    n_pad is only rounded up to the 128 lane width (no over-padding of the
    dominant N^2 stream).  tk is a multiple of 128 that divides n_pad; tm is a
    multiple of 8 that divides n_pad, and we keep >= 2 row tiles whenever the
    graph is big enough so the 'parallel' axis can split across v7x's 2 TCs.
    """
    n_pad = _round_up(max(n, 1), LANE)

    def fit_lane(req):
        t = min(_round_up(max(req, LANE), LANE), n_pad)
        while n_pad % t:
            t -= LANE
        return t

    tk = fit_lane(tk_req)
    tm = fit_lane(tm_req)
    if n_pad // tm < 2 and n_pad >= 2 * LANE:
        tm = n_pad // 2  # multiple of 64 (>=8 sublane), divides n_pad exactly
    return n_pad, tm, tk


def gcn_agg_kernel(adj_ref, z_ref, drow_ref, b_ref, o_ref, acc_ref, *,
                   apply_relu, tk, z_resident):
    """out = act( d_row * (A @ Z) + b ) for one (row tile, reduction tile)."""
    k = pl.program_id(1)

    @pl.when(k == 0)
    def _():
        acc_ref[...] = jnp.zeros_like(acc_ref)

    if z_resident:
        off = pl.multiple_of(k * tk, tk)
        z_blk = z_ref[pl.ds(off, tk), :]
    else:
        z_blk = z_ref[...]

    # bf16 operands -> single MXU pass; f32 operands -> force full precision.
    prec = jax.lax.Precision.HIGHEST if z_blk.dtype == jnp.float32 else None
    acc_ref[...] += jnp.dot(adj_ref[...], z_blk,
                            preferred_element_type=jnp.float32,
                            precision=prec)

    @pl.when(k == pl.num_programs(1) - 1)
    def _():
        y = acc_ref[...] * drow_ref[...] + b_ref[...]
        if apply_relu:
            y = jnp.maximum(y, 0.0)
        o_ref[...] = y.astype(o_ref.dtype)


def gcn_aggregate(adj, z, d, b, *, apply_relu, out_dtype, tm, tk, vmem_limit):
    """adj: (Np,Np) compute dtype, z: (Np,Fout) compute dtype (already
    projected & column-scaled), d: (Np,1) f32, b: (1,Fout) f32."""
    n_pad = adj.shape[0]
    fout = z.shape[1]
    assert adj.shape == (n_pad, n_pad)
    assert n_pad % tm == 0 and n_pad % tk == 0
    assert fout % LANE == 0

    # Keep the projected features VMEM-resident when they comfortably fit;
    # otherwise stream them per reduction tile.
    z_resident = n_pad * fout * z.dtype.itemsize <= vmem_limit // 4
    if z_resident:
        z_spec = pl.BlockSpec((n_pad, fout), lambda i, k: (0, 0))
    else:
        z_spec = pl.BlockSpec((tk, fout), lambda i, k: (k, 0))

    grid = (n_pad // tm, n_pad // tk)
    flops = 2 * n_pad * n_pad * fout
    bytes_accessed = (n_pad * n_pad * adj.dtype.itemsize                 # adjacency stream
                      + (1 if z_resident else grid[0]) * n_pad * fout * z.dtype.itemsize
                      + n_pad * fout * jnp.dtype(out_dtype).itemsize     # output
                      + 2 * n_pad * 4 + fout * 4)                        # d, bias

    kernel = functools.partial(gcn_agg_kernel, apply_relu=apply_relu,
                               tk=tk, z_resident=z_resident)

    return pl.pallas_call(
        kernel,
        out_shape=jax.ShapeDtypeStruct((n_pad, fout), out_dtype),
        grid_spec=pltpu.PrefetchScalarGridSpec(
            num_scalar_prefetch=0,
            grid=grid,
            in_specs=[
                pl.BlockSpec((tm, tk), lambda i, k: (i, k)),     # adjacency tile
                z_spec,                                          # projected features
                pl.BlockSpec((tm, 1), lambda i, k: (i, 0)),      # d (row side)
                pl.BlockSpec((1, fout), lambda i, k: (0, 0)),    # bias (resident)
            ],
            out_specs=pl.BlockSpec((tm, fout), lambda i, k: (i, 0)),
            scratch_shapes=[pltpu.VMEM((tm, fout), jnp.float32)],
        ),
        compiler_params=pltpu.CompilerParams(
            dimension_semantics=("parallel", "arbitrary"),
            vmem_limit_bytes=vmem_limit,
        ),
        cost_estimate=pl.CostEstimate(flops=int(flops), transcendentals=0,
                                      bytes_accessed=int(bytes_accessed)),
    )(adj, z, d, b)


def aegcn_forward(adj, x, w1, b1, w2, b2, *, tm=512, tk=512,
                  compute_dtype=jnp.bfloat16):
    """AEGCN forward.  adj: (N,N) raw 0/1 adjacency, x: (N,F), w1: (F,H),
    b1: (H,), w2: (H,F), b2: (F,).  The adjacency stream uses `compute_dtype`
    (bf16 default: exact for 0/1 entries, halves HBM bytes); accumulation is
    always f32."""
    n, f = x.shape
    h = w1.shape[1]
    assert adj.shape[0] == adj.shape[1]

    f_pad = _round_up(f, LANE)
    h_pad = _round_up(h, LANE)
    n_pad, tm, tk = _pick_tiles(n, tm, tk)
    vmem_limit = _vmem_limit_bytes()
    hi = jax.lax.Precision.HIGHEST

    # Degree normalization (single pass over A, exact in f32).  Clamp >= 1 as
    # in the reference implementation; padded rows get d = 1 (value irrelevant
    # since padded rows/cols of A and Z are zero).
    deg = jnp.maximum(jnp.sum(adj.astype(jnp.float32), axis=1), 1.0)
    d = jax.lax.rsqrt(deg).reshape(-1, 1)
    if d.shape[0] < n_pad:
        d = jnp.pad(d, ((0, n_pad - d.shape[0]), (0, 0)), constant_values=1.0)

    # Adjacency: cast + pad only when needed (skipped entirely if the caller
    # already passes a pre-cast, tile-aligned adjacency).
    adj_p = adj
    if adj_p.dtype != compute_dtype:
        adj_p = adj_p.astype(compute_dtype)
    if adj_p.shape != (n_pad, n_pad):
        adj_p = jnp.pad(adj_p, ((0, n_pad - adj_p.shape[0]),
                                (0, n_pad - adj_p.shape[1])))

    # Dense parameters (tiny), lane-dense padded, f32.
    x_p = jnp.pad(x.astype(jnp.float32), ((0, n_pad - n), (0, f_pad - f)))
    w1_p = jnp.pad(w1.astype(jnp.float32), ((0, f_pad - f), (0, h_pad - h)))
    b1_p = jnp.pad(b1.astype(jnp.float32), (0, h_pad - h)).reshape(1, h_pad)
    w2_p = jnp.pad(w2.astype(jnp.float32), ((0, h_pad - h), (0, f_pad - f)))
    b2_p = jnp.pad(b2.astype(jnp.float32), (0, f_pad - f)).reshape(1, f_pad)

    # Layer 1: Z1 = (D^-1/2 X) W1 projected once (small matmul, f32, hoisted
    # out of the grid), then the kernel streams A over it.
    z1 = jnp.dot(d * x_p, w1_p, precision=hi).astype(compute_dtype)
    h1 = gcn_aggregate(adj_p, z1, d, b1_p, apply_relu=True,
                       out_dtype=compute_dtype, tm=tm, tk=tk,
                       vmem_limit=vmem_limit)

    # Layer 2: same structure, H1 consumed directly in compute dtype.
    z2 = jnp.dot(d * h1.astype(jnp.float32), w2_p,
                 precision=hi).astype(compute_dtype)
    out = gcn_aggregate(adj_p, z2, d, b2_p, apply_relu=False,
                        out_dtype=jnp.float32, tm=tm, tk=tk,
                        vmem_limit=vmem_limit)
    return out[:n, :f]


if __name__ == "__main__":
    # Small shapes consistent with the module: N nodes, in_feats -> hidden -> in_feats.
    N = 256
    in_feats = 8
    hidden = 32
    # num_classes is unused by AEGCN.forward (conv2 maps back to in_feats).

    key = jax.random.PRNGKey(0)
    k_adj, k_x, k_w1, k_b1, k_w2, k_b2 = jax.random.split(key, 6)

    # Deterministic random symmetric adjacency with self-loops (degrees > 0).
    a = (jax.random.uniform(k_adj, (N, N)) < 0.05).astype(jnp.float32)
    a = jnp.maximum(a, a.T)
    adj = jnp.maximum(a, jnp.eye(N, dtype=jnp.float32))

    x = jax.random.normal(k_x, (N, in_feats), dtype=jnp.float32)
    w1 = jax.random.normal(k_w1, (in_feats, hidden), dtype=jnp.float32) * 0.1
    b1 = jax.random.normal(k_b1, (hidden,), dtype=jnp.float32) * 0.1
    w2 = jax.random.normal(k_w2, (hidden, in_feats), dtype=jnp.float32) * 0.1
    b2 = jax.random.normal(k_b2, (in_feats,), dtype=jnp.float32) * 0.1

    # Pure-JAX reference of the same math (explicit normalized adjacency).
    with jax.default_matmul_precision("highest"):
        deg = jnp.maximum(adj.sum(axis=1), 1.0)
        d_inv_sqrt = deg ** -0.5
        a_hat = adj * d_inv_sqrt[:, None] * d_inv_sqrt[None, :]
        h1_ref = jnp.maximum(a_hat @ x @ w1 + b1, 0.0)
        out_ref = a_hat @ h1_ref @ w2 + b2

    # Default path: bf16 adjacency stream, f32 MXU accumulation.
    out_bf16 = jax.block_until_ready(
        jax.jit(aegcn_forward)(adj, x, w1, b1, w2, b2))
    assert out_bf16.shape == (N, in_feats)
    err_bf16 = float(jnp.max(jnp.abs(out_bf16 - out_ref)))
    assert jnp.allclose(out_bf16, out_ref, atol=1e-2, rtol=1e-2), err_bf16

    # f32 adjacency stream: tight correctness check.
    fwd_f32 = jax.jit(functools.partial(aegcn_forward,
                                        compute_dtype=jnp.float32))
    out_f32 = jax.block_until_ready(fwd_f32(adj, x, w1, b1, w2, b2))
    err_f32 = float(jnp.max(jnp.abs(out_f32 - out_ref)))
    assert jnp.allclose(out_f32, out_ref, atol=1e-3, rtol=1e-3), err_f32

    print("KERNEL_OK")
</pallas_src>

<mosaic_0001>
module attributes {stable_mosaic.version = 11 : i64} {
  func.func @gcn_agg_kernel(%arg0: i32, %arg1: i32, %arg2: memref<128x256xbf16, #tpu.memory_space<vmem>>, %arg3: memref<256x128xbf16, #tpu.memory_space<vmem>>, %arg4: memref<128x1xf32, #tpu.memory_space<vmem>>, %arg5: memref<1x128xf32, #tpu.memory_space<vmem>>, %arg6: memref<128x128xbf16, #tpu.memory_space<vmem>>, %arg7: memref<128x128xf32, #tpu.memory_space<vmem>>) attributes {dimension_semantics = [#tpu.dimension_semantics<parallel>, #tpu.dimension_semantics<arbitrary>], iteration_bounds = array<i64: 2, 1>, scalar_prefetch = 0 : i64, scratch_operands = 1 : i64, tpu.core_type = #tpu.core_type<tc>, window_params = [{transform_indices = @transform_0, window_bounds = array<i64: 128, 256>}, {pipeline_mode = #tpu.pipeline_mode<synchronous>, transform_indices = @transform_1, window_bounds = array<i64: 256, 128>}, {transform_indices = @transform_2, window_bounds = array<i64: 128, 1>}, {pipeline_mode = #tpu.pipeline_mode<synchronous>, transform_indices = @transform_3, window_bounds = array<i64: 1, 128>}, {transform_indices = @transform_4, window_bounds = array<i64: 128, 128>}]} {
    %c0_i32 = arith.constant 0 : i32
    %0 = arith.cmpi eq, %arg1, %c0_i32 : i32
    %1 = arith.extui %0 : i1 to i32
    %c0_i32_0 = arith.constant 0 : i32
    %2 = arith.cmpi ne, %1, %c0_i32_0 : i32
    scf.if %2 {
      %cst_9 = arith.constant 0.000000e+00 : f32
      %15 = vector.broadcast %cst_9 : f32 to vector<128x128xf32>
      %c0_10 = arith.constant 0 : index
      %c0_11 = arith.constant 0 : index
      %16 = vector.load %arg7[%c0_10, %c0_11] : memref<128x128xf32, #tpu.memory_space<vmem>>, vector<128x128xf32>
      tpu.vector_store %arg7[%c0_10, %c0_11], %15 {strides = array<i32>} : memref<128x128xf32, #tpu.memory_space<vmem>>, vector<128x128xf32>,
    } else {
    }
    %c256_i32 = arith.constant 256 : i32
    %3 = arith.muli %arg1, %c256_i32 : i32
    %4 = tpu.assume_multiple %3, 256 : i32
    %5 = arith.index_cast %4 : i32 to index
    %c0 = arith.constant 0 : index
    %6 = vector.load %arg3[%5, %c0] : memref<256x128xbf16, #tpu.memory_space<vmem>>, vector<256x128xbf16>
    %c0_1 = arith.constant 0 : index
    %c0_2 = arith.constant 0 : index
    %7 = vector.load %arg7[%c0_1, %c0_2] : memref<128x128xf32, #tpu.memory_space<vmem>>, vector<128x128xf32>
    %c0_3 = arith.constant 0 : index
    %c0_4 = arith.constant 0 : index
    %8 = vector.load %arg2[%c0_3, %c0_4] : memref<128x256xbf16, #tpu.memory_space<vmem>>, vector<128x256xbf16>
    %cst = arith.constant dense<0.000000e+00> : vector<128x128xf32>
    %9 = tpu.matmul %8, %6, %cst {dimension_numbers = #tpu.dot_dimension_numbers<[1], [0], [0], [1], [0, 0, 1, 1], [], []>} : vector<128x256xbf16>, vector<256x128xbf16>, vector<128x128xf32> -> vector<128x128xf32>
    %10 = arith.addf %7, %9 : vector<128x128xf32>
    %c0_5 = arith.constant 0 : index
    %c0_6 = arith.constant 0 : index
    %11 = vector.load %arg7[%c0_5, %c0_6] : memref<128x128xf32, #tpu.memory_space<vmem>>, vector<128x128xf32>
    tpu.vector_store %arg7[%c0_5, %c0_6], %10 {strides = array<i32>} : memref<128x128xf32, #tpu.memory_space<vmem>>, vector<128x128xf32>,
    %c0_i32_7 = arith.constant 0 : i32
    %12 = arith.cmpi eq, %arg1, %c0_i32_7 : i32
    %13 = arith.extui %12 : i1 to i32
    %c0_i32_8 = arith.constant 0 : i32
    %14 = arith.cmpi ne, %13, %c0_i32_8 : i32
    scf.if %14 {
      %c0_9 = arith.constant 0 : index
      %c0_10 = arith.constant 0 : index
      %15 = vector.load %arg7[%c0_9, %c0_10] : memref<128x128xf32, #tpu.memory_space<vmem>>, vector<128x128xf32>
      %c0_11 = arith.constant 0 : index
      %c0_12 = arith.constant 0 : index
      %16 = vector.load %arg4[%c0_11, %c0_12] : memref<128x1xf32, #tpu.memory_space<vmem>>, vector<128x1xf32>
      %17 = vector.broadcast %16 : vector<128x1xf32> to vector<128x128xf32>
      %18 = arith.mulf %15, %17 : vector<128x128xf32>
      %c0_13 = arith.constant 0 : index
      %c0_14 = arith.constant 0 : index
      %19 = vector.load %arg5[%c0_13, %c0_14] : memref<1x128xf32, #tpu.memory_space<vmem>>, vector<1x128xf32>
      %20 = vector.broadcast %19 : vector<1x128xf32> to vector<128x128xf32>
      %21 = arith.addf %18, %20 : vector<128x128xf32>
      %cst_15 = arith.constant 0.000000e+00 : f32
      %22 = vector.broadcast %cst_15 : f32 to vector<128x128xf32>
      %23 = arith.maximumf %21, %22 : vector<128x128xf32>
      %24 = arith.truncf %23 : vector<128x128xf32> to vector<128x128xbf16>
      %c0_16 = arith.constant 0 : index
      %c0_17 = arith.constant 0 : index
      %25 = vector.load %arg6[%c0_16, %c0_17] : memref<128x128xbf16, #tpu.memory_space<vmem>>, vector<128x128xbf16>
      tpu.vector_store %arg6[%c0_16, %c0_17], %24 {strides = array<i32>} : memref<128x128xbf16, #tpu.memory_space<vmem>>, vector<128x128xbf16>,
    } else {
    }
    return
  }
  func.func @transform_0(%arg0: i32, %arg1: i32) -> (i32, i32) {
    %c0_i32 = arith.constant 0 : i32
    return %arg0, %arg1 : i32, i32
  }
  func.func @transform_1(%arg0: i32, %arg1: i32) -> (i32, i32) {
    %c0_i32 = arith.constant 0 : i32
    %c0_i32_0 = arith.constant 0 : i32
    %c0_i32_1 = arith.constant 0 : i32
    return %c0_i32, %c0_i32_0 : i32, i32
  }
  func.func @transform_2(%arg0: i32, %arg1: i32) -> (i32, i32) {
    %c0_i32 = arith.constant 0 : i32
    %c0_i32_0 = arith.constant 0 : i32
    return %arg0, %c0_i32 : i32, i32
  }
  func.func @transform_3(%arg0: i32, %arg1: i32) -> (i32, i32) {
    %c0_i32 = arith.constant 0 : i32
    %c0_i32_0 = arith.constant 0 : i32
    %c0_i32_1 = arith.constant 0 : i32
    return %c0_i32, %c0_i32_0 : i32, i32
  }
  func.func @transform_4(%arg0: i32, %arg1: i32) -> (i32, i32) {
    %c0_i32 = arith.constant 0 : i32
    %c0_i32_0 = arith.constant 0 : i32
    return %arg0, %c0_i32 : i32, i32
  }
}

module attributes {stable_mosaic.version = 11 : i64} {
  func.func @gcn_agg_kernel(%arg0: i32, %arg1: i32, %arg2: memref<128x256xbf16, #tpu.memory_space<vmem>>, %arg3: memref<256x128xbf16, #tpu.memory_space<vmem>>, %arg4: memref<128x1xf32, #tpu.memory_space<vmem>>, %arg5: memref<1x128xf32, #tpu.memory_space<vmem>>, %arg6: memref<128x128xf32, #tpu.memory_space<vmem>>, %arg7: memref<128x128xf32, #tpu.memory_space<vmem>>) attributes {dimension_semantics = [#tpu.dimension_semantics<parallel>, #tpu.dimension_semantics<arbitrary>], iteration_bounds = array<i64: 2, 1>, scalar_prefetch = 0 : i64, scratch_operands = 1 : i64, tpu.core_type = #tpu.core_type<tc>, window_params = [{transform_indices = @transform_0, window_bounds = array<i64: 128, 256>}, {pipeline_mode = #tpu.pipeline_mode<synchronous>, transform_indices = @transform_1, window_bounds = array<i64: 256, 128>}, {transform_indices = @transform_2, window_bounds = array<i64: 128, 1>}, {pipeline_mode = #tpu.pipeline_mode<synchronous>, transform_indices = @transform_3, window_bounds = array<i64: 1, 128>}, {transform_indices = @transform_4, window_bounds = array<i64: 128, 128>}]} {
    %c0_i32 = arith.constant 0 : i32
    %0 = arith.cmpi eq, %arg1, %c0_i32 : i32
    %1 = arith.extui %0 : i1 to i32
    %c0_i32_0 = arith.constant 0 : i32
    %2 = arith.cmpi ne, %1, %c0_i32_0 : i32
    scf.if %2 {
      %cst_9 = arith.constant 0.000000e+00 : f32
      %15 = vector.broadcast %cst_9 : f32 to vector<128x128xf32>
      %c0_10 = arith.constant 0 : index
      %c0_11 = arith.constant 0 : index
      %16 = vector.load %arg7[%c0_10, %c0_11] : memref<128x128xf32, #tpu.memory_space<vmem>>, vector<128x128xf32>
      tpu.vector_store %arg7[%c0_10, %c0_11], %15 {strides = array<i32>} : memref<128x128xf32, #tpu.memory_space<vmem>>, vector<128x128xf32>,
    } else {
    }
    %c256_i32 = arith.constant 256 : i32
    %3 = arith.muli %arg1, %c256_i32 : i32
    %4 = tpu.assume_multiple %3, 256 : i32
    %5 = arith.index_cast %4 : i32 to index
    %c0 = arith.constant 0 : index
    %6 = vector.load %arg3[%5, %c0] : memref<256x128xbf16, #tpu.memory_space<vmem>>, vector<256x128xbf16>
    %c0_1 = arith.constant 0 : index
    %c0_2 = arith.constant 0 : index
    %7 = vector.load %arg7[%c0_1, %c0_2] : memref<128x128xf32, #tpu.memory_space<vmem>>, vector<128x128xf32>
    %c0_3 = arith.constant 0 : index
    %c0_4 = arith.constant 0 : index
    %8 = vector.load %arg2[%c0_3, %c0_4] : memref<128x256xbf16, #tpu.memory_space<vmem>>, vector<128x256xbf16>
    %cst = arith.constant dense<0.000000e+00> : vector<128x128xf32>
    %9 = tpu.matmul %8, %6, %cst {dimension_numbers = #tpu.dot_dimension_numbers<[1], [0], [0], [1], [0, 0, 1, 1], [], []>} : vector<128x256xbf16>, vector<256x128xbf16>, vector<128x128xf32> -> vector<128x128xf32>
    %10 = arith.addf %7, %9 : vector<128x128xf32>
    %c0_5 = arith.constant 0 : index
    %c0_6 = arith.constant 0 : index
    %11 = vector.load %arg7[%c0_5, %c0_6] : memref<128x128xf32, #tpu.memory_space<vmem>>, vector<128x128xf32>
    tpu.vector_store %arg7[%c0_5, %c0_6], %10 {strides = array<i32>} : memref<128x128xf32, #tpu.memory_space<vmem>>, vector<128x128xf32>,
    %c0_i32_7 = arith.constant 0 : i32
    %12 = arith.cmpi eq, %arg1, %c0_i32_7 : i32
    %13 = arith.extui %12 : i1 to i32
    %c0_i32_8 = arith.constant 0 : i32
    %14 = arith.cmpi ne, %13, %c0_i32_8 : i32
    scf.if %14 {
      %c0_9 = arith.constant 0 : index
      %c0_10 = arith.constant 0 : index
      %15 = vector.load %arg7[%c0_9, %c0_10] : memref<128x128xf32, #tpu.memory_space<vmem>>, vector<128x128xf32>
      %c0_11 = arith.constant 0 : index
      %c0_12 = arith.constant 0 : index
      %16 = vector.load %arg4[%c0_11, %c0_12] : memref<128x1xf32, #tpu.memory_space<vmem>>, vector<128x1xf32>
      %17 = vector.broadcast %16 : vector<128x1xf32> to vector<128x128xf32>
      %18 = arith.mulf %15, %17 : vector<128x128xf32>
      %c0_13 = arith.constant 0 : index
      %c0_14 = arith.constant 0 : index
      %19 = vector.load %arg5[%c0_13, %c0_14] : memref<1x128xf32, #tpu.memory_space<vmem>>, vector<1x128xf32>
      %20 = vector.broadcast %19 : vector<1x128xf32> to vector<128x128xf32>
      %21 = arith.addf %18, %20 : vector<128x128xf32>
      %c0_15 = arith.constant 0 : index
      %c0_16 = arith.constant 0 : index
      %22 = vector.load %arg6[%c0_15, %c0_16] : memref<128x128xf32, #tpu.memory_space<vmem>>, vector<128x128xf32>
      tpu.vector_store %arg6[%c0_15, %c0_16], %21 {strides = array<i32>} : memref<128x128xf32, #tpu.memory_space<vmem>>, vector<128x128xf32>,
    } else {
    }
    return
  }
  func.func @transform_0(%arg0: i32, %arg1: i32) -> (i32, i32) {
    %c0_i32 = arith.constant 0 : i32
    return %arg0, %arg1 : i32, i32
  }
  func.func @transform_1(%arg0: i32, %arg1: i32) -> (i32, i32) {
    %c0_i32 = arith.constant 0 : i32
    %c0_i32_0 = arith.constant 0 : i32
    %c0_i32_1 = arith.constant 0 : i32
    return %c0_i32, %c0_i32_0 : i32, i32
  }
  func.func @transform_2(%arg0: i32, %arg1: i32) -> (i32, i32) {
    %c0_i32 = arith.constant 0 : i32
    %c0_i32_0 = arith.constant 0 : i32
    return %arg0, %c0_i32 : i32, i32
  }
  func.func @transform_3(%arg0: i32, %arg1: i32) -> (i32, i32) {
    %c0_i32 = arith.constant 0 : i32
    %c0_i32_0 = arith.constant 0 : i32
    %c0_i32_1 = arith.constant 0 : i32
    return %c0_i32, %c0_i32_0 : i32, i32
  }
  func.func @transform_4(%arg0: i32, %arg1: i32) -> (i32, i32) {
    %c0_i32 = arith.constant 0 : i32
    %c0_i32_0 = arith.constant 0 : i32
    return %arg0, %c0_i32 : i32, i32
  }
}

</mosaic_0001>

<bundles_post_ra>
// kernel: aegcn_forward.2
= control target key start
LH: loop header
LB: loop body
LE: loop exit
PB: predicated region body
PF: predicated region fallthrough
CT: control target
= control target key end

     0   :  { %s1165_s15 = smov 0   ;;  %s1167_s16 = smov 0   ;;  %s1335_s0 = inlined_call_operand.vmem [shape: bf16[256,256], index: 0, kind: input, shape index: {}]   ;;  %s1336_s1 = inlined_call_operand.vmem [shape: bf16[256,128], index: 1, kind: input, shape index: {}]   ;;  %s1337_s2 = inlined_call_operand.vmem [shape: f32[256,1], index: 2, kind: input, shape index: {}]   ;;  %s1338_s3 = inlined_call_operand.vmem [shape: f32[1,128], index: 3, kind: input, shape index: {}]   ;;  %s1339_s4 = inlined_call_operand.vmem [shape: bf16[256,128], index: 4, kind: output, shape index: {}]  }
   0x1   :  { %s1169_s17 = smov 0  }
   0x2 LB: > { %s26_s18 = sadd.s32 1, %s1133_s16  ;;  %p924_p0 = scmp.ge.s32.totalorder %s1137_s17, 1  ;;  %s1137_s17 = sphi %s1169_s17, %s14_s17   ;;  %s1133_s16 = sphi %s1167_s16, %s1341_s16   ;;  %s1129_s15 = sphi %s1165_s15, %s1340_s15  }
   0x3   : > { %p28_p1 = scmp.ge.s32.totalorder %s26_s18, 2  ;;  %p194_p2 = scmp.lt.s32.totalorder %s1137_s17, 3 }
   0x5   : > { %s1343_s18 = smov (%p28_p1, %s26_s18), 0  ;;  %p195_p3 = pnand %p924_p0, %p194_p2 }
   0x6   : > { %v1075_v0 = vld [vmem:[%s1336_s1 + $0x40] sm:$0xff] (!%p195_p3)   ;;  %s925_s21 = sshll.u32 (!%p195_p3), %s1129_s15, 4  ;;  %v1077_v2 = vld [vmem:[%s1336_s1 + $0x48] sm:$0xff] (!%p195_p3)   ;;  %v1079_v4 = vld [vmem:[%s1336_s1 + $0x50] sm:$0xff] (!%p195_p3)   ;;  %v1139_v5 = vmov (!%p195_p3), 0  }
   0x7   : > { %198 = sbr.rel (%p195_p3) target bundleno = 290 (0x122), region = 36  ;;  %v1076_v1 = vld [vmem:[%s1336_s1] sm:$0xff] (!%p195_p3)   ;;  %968 = vmatprep.subr.bf16.mxu0 (!%p195_p3), %v1075_v0  ;;  %1032 = vmatprep.subr.bf16.mxu1 (!%p195_p3), %v1075_v0  ;;  %v1078_v3 = vld [vmem:[%s1336_s1 + $0x8] sm:$0xff] (!%p195_p3)   ;;  %p232_p4 = scmp.lt.s32.totalorder (!%p195_p3), %s925_s21, 31  ;;  %v1080_v6 = vld [vmem:[%s1336_s1 + $0x10] sm:$0xff] (!%p195_p3)  }
   0x8   : > { %969 = vmatpush3.bf16.msra.mxu0 (!%p195_p3), %v1076_v1  ;;  %1040 = vmatpush3.bf16.msra.mxu1 (!%p195_p3), %v1076_v1  ;;  %v1081_v7 = vld [vmem:[%s1336_s1 + $0x58] sm:$0xff] (!%p195_p3)   ;;  %v1083_v9 = vld [vmem:[%s1336_s1 + $0x60] sm:$0xff] (!%p195_p3)   ;;  %v1085_v11 = vld [vmem:[%s1336_s1 + $0x68] sm:$0xff] (!%p195_p3)  }
   0x9   : > { %970 = vmatprep.subr.bf16.mxu0 (!%p195_p3), %v1077_v2  ;;  %1033 = vmatprep.subr.bf16.mxu1 (!%p195_p3), %v1077_v2  ;;  %v1082_v8 = vld [vmem:[%s1336_s1 + $0x18] sm:$0xff] (!%p195_p3)   ;;  %v1084_v10 = vld [vmem:[%s1336_s1 + $0x20] sm:$0xff] (!%p195_p3)   ;;  %v1086_v14 = vld [vmem:[%s1336_s1 + $0x28] sm:$0xff] (!%p195_p3)  }
   0xa   : > { %1074 = vset.pattern.permute.xlu1 (!%p195_p3), %v1139_v5  ;;  %1073 = vset.pattern.permute.xlu0 (!%p195_p3), %v1139_v5  ;;  %v1087_v15 = vld [vmem:[%s1336_s1 + $0x70] sm:$0xff] (!%p195_p3)   ;;  %v1089_v17 = vld [vmem:[%s1336_s1 + $0x78] sm:$0xff] (!%p195_p3)   ;;  %v1291_v2 = vld [vmem:[%s1338_s3] ss:$0 sm:$0xff] (!%p195_p3) }
   0xb   : > { %v1088_v16 = vld [vmem:[%s1336_s1 + $0x30] sm:$0xff] (!%p195_p3)   ;;  %v1090_v19 = vld [vmem:[%s1336_s1 + $0x38] sm:$0xff] (!%p195_p3)  }
   0xc   : > { %971 = vmatpush3.bf16.msra.mxu0 (!%p195_p3), %v1078_v3  ;;  %1041 = vmatpush3.bf16.msra.mxu1 (!%p195_p3), %v1078_v3 }
   0xd   : > { %972 = vmatprep.subr.bf16.mxu0 (!%p195_p3), %v1079_v4  ;;  %1034 = vmatprep.subr.bf16.mxu1 (!%p195_p3), %v1079_v4 }
   0xe   : > { %s1345_s21 = smov (!%p232_p4, %s925_s21), 31 }
   0xf   : > { %s967_s10 = sshll.u32 %s1345_s21, 3 }
  0x10   : > { %973 = vmatpush3.bf16.msra.mxu0 %v1080_v6  ;;  %1042 = vmatpush3.bf16.msra.mxu1 %v1080_v6  ;;  %s1219_s19 = scalar_lea.vmem %s1335_s0, %s967_s10  ;;  %s1241_s6 = scalar_lea.vmem %s1337_s2, %s967_s10 }
  0x11   : > { %974 = vmatprep.subr.bf16.mxu0 %v1081_v7  ;;  %1035 = vmatprep.subr.bf16.mxu1 %v1081_v7  ;;  %v1093_v12 = vld [vmem:[%s1219_s19 + $0x4] ss:$8 sps:$4 sm:$0xff]   ;;  %v670_v18 = vld [vmem:[%s1241_s6 + $0x10] sm:$0xff]  ;;  %v1091_v21 = vld [vmem:[%s1219_s19] ss:$8 sps:$4 sm:$0xff]   ;;  %s930_s10 = sshll.u32 %s1129_s15, 3 }
  0x12   : > { %v1096_v13 = vld [vmem:[%s1219_s19 + $0x44] ss:$8 sps:$4 sm:$0xff]   ;;  %552 = vmatprep.mubr.bf16.mxu0 %v1093_v12  ;;  %696 = vperm.xlu1 %1074, %v670_v18   ;;  %v1094_v22 = vld [vmem:[%s1219_s19 + $0x40] ss:$8 sps:$4 sm:$0xff]   ;;  %v671_v23 = vld [vmem:[%s1241_s6 + $0x18] sm:$0xff]  ;;  %p249_p5 = scmp.lt.s32.totalorder %s930_s10, 15 }
  0x13   : > { %584 = vmatprep.mubr.bf16.mxu1 %v1096_v13  ;;  %v668_v20 = vld [vmem:[%s1241_s6] sm:$0xff]  ;;  %v669_v24 = vld [vmem:[%s1241_s6 + $0x8] sm:$0xff]  ;;  %v1097_v25 = vld [vmem:[%s1219_s19 + $0x14] ss:$8 sps:$4 sm:$0xff]  }
  0x14   : > { %975 = vmatpush3.bf16.msra.mxu0 %v1082_v8  ;;  %1043 = vmatpush3.bf16.msra.mxu1 %v1082_v8  ;;  %v1099_v26 = vld [vmem:[%s1219_s19 + $0x54] ss:$8 sps:$4 sm:$0xff]   ;;  %v673_v27 = vld [vmem:[%s1241_s6 + $0x28] sm:$0xff]  ;;  %v672_v28 = vld [vmem:[%s1241_s6 + $0x20] sm:$0xff]  ;;  %s1347_s10 = smov (!%p249_p5, %s930_s10), 15 }
  0x15   : > { %976 = vmatprep.subr.bf16.mxu0 %v1083_v9  ;;  %1036 = vmatprep.subr.bf16.mxu1 %v1083_v9  ;;  %v1101_v29 = vld [vmem:[%s1219_s19 + $0x10] ss:$8 sps:$4 sm:$0xff]   ;;  %v1103_v33 = vld [vmem:[%s1219_s19 + $0x24] ss:$8 sps:$4 sm:$0xff]   ;;  %v1107_v37 = vld [vmem:[%s1219_s19 + $0x20] ss:$8 sps:$4 sm:$0xff]  }
  0x16   : > { %686 = vperm.xlu0 %1073, %v668_v20   ;;  %701 = vperm.xlu1 %1074, %v671_v23   ;;  %v1102_v30 = vld [vmem:[%s1219_s19 + $0x50] ss:$8 sps:$4 sm:$0xff]   ;;  %v1105_v34 = vld [vmem:[%s1219_s19 + $0x64] ss:$8 sps:$4 sm:$0xff]   ;;  %v1108_v38 = vld [vmem:[%s1219_s19 + $0x60] ss:$8 sps:$4 sm:$0xff]  }
  0x17   : > { %v675_v31 = vld [vmem:[%s1241_s6 + $0x38] sm:$0xff]  ;;  %v674_v32 = vld [vmem:[%s1241_s6 + $0x30] sm:$0xff]  ;;  %v677_v35 = vld [vmem:[%s1241_s6 + $0x48] sm:$0xff]  ;;  %s931_s15 = sshll.u32 %s1347_s10, 3 }
  0x18   : > { %977 = vmatpush3.bf16.msra.mxu0 %v1084_v10  ;;  %1044 = vmatpush3.bf16.msra.mxu1 %v1084_v10  ;;  %v676_v36 = vld [vmem:[%s1241_s6 + $0x40] sm:$0xff]  ;;  %v679_v39 = vld [vmem:[%s1241_s6 + $0x58] sm:$0xff]  ;;  %v678_v40 = vld [vmem:[%s1241_s6 + $0x50] sm:$0xff]  ;;  %s1300_s20 = scalar_lea.vmem %s1339_s4, %s931_s15 }
  0x19   : > { %978 = vmatprep.subr.bf16.mxu0 %v1085_v11  ;;  %1037 = vmatprep.subr.bf16.mxu1 %v1085_v11  ;;  %v1109_v41 = vld [vmem:[%s1219_s19 + $0x34] ss:$8 sps:$4 sm:$0xff]   ;;  %v681_v43 = vld [vmem:[%s1241_s6 + $0x68] sm:$0xff]  ;;  %v680_v44 = vld [vmem:[%s1241_s6 + $0x60] sm:$0xff] }
  0x1a   : > { %691 = vperm.xlu0 %1073, %v669_v24   ;;  %711 = vperm.xlu1 %1074, %v673_v27   ;;  %v1111_v42 = vld [vmem:[%s1219_s19 + $0x74] ss:$8 sps:$4 sm:$0xff]   ;;  %v1113_v45 = vld [vmem:[%s1219_s19 + $0x30] ss:$8 sps:$4 sm:$0xff]  }
  0x1b   : > { %v1114_v46 = vld [vmem:[%s1219_s19 + $0x70] ss:$8 sps:$4 sm:$0xff]  }
  0x1c   : > { %979 = vmatpush3.bf16.msra.mxu0 %v1086_v14  ;;  %1045 = vmatpush3.bf16.msra.mxu1 %v1086_v14  ;;  %v683_v47 = vld [vmem:[%s1241_s6 + $0x78] sm:$0xff]  ;;  %v682_v48 = vld [vmem:[%s1241_s6 + $0x70] sm:$0xff] }
  0x1d   : > { %980 = vmatprep.subr.bf16.mxu0 %v1087_v15  ;;  %1038 = vmatprep.subr.bf16.mxu1 %v1087_v15 }
  0x1e   : > { %706 = vperm.xlu0 %1073, %v672_v28   ;;  %721 = vperm.xlu1 %1074, %v675_v31  }
  0x20   : > { %981 = vmatpush3.bf16.msra.mxu0 %v1088_v16  ;;  %1046 = vmatpush3.bf16.msra.mxu1 %v1088_v16 }
  0x21   : > { %982 = vmatprep.subr.bf16.mxu0 %v1089_v17  ;;  %1039 = vmatprep.subr.bf16.mxu1 %v1089_v17 }
  0x22   : > { %716 = vperm.xlu0 %1073, %v674_v32   ;;  %731 = vperm.xlu1 %1074, %v677_v35  }
  0x24   : > { %983 = vmatpush3.bf16.msra.mxu0 %v1090_v19  ;;  %1047 = vmatpush3.bf16.msra.mxu1 %v1090_v19 }
  0x26   : > { %726 = vperm.xlu0 %1073, %v676_v36   ;;  %741 = vperm.xlu1 %1074, %v679_v39  }
  0x27   : > { %553 = vmatmul.mubr.bf16.vlgmr.msra.gmra.mrb[0].mxu0 %v1091_v21  ;;  %585 = vmatmul.mubr.bf16.vlgmr.msra.gmra.mrb[0].mxu1 %v1094_v22 }
  0x28   : > { %560 = vmatprep.mubr.bf16.mxu0 %v1097_v25  ;;  %592 = vmatprep.mubr.bf16.mxu1 %v1099_v26 }
  0x2a   : > { %736 = vperm.xlu0 %1073, %v678_v40   ;;  %751 = vperm.xlu1 %1074, %v681_v43  }
  0x2e   : > { %746 = vperm.xlu0 %1073, %v680_v44   ;;  %761 = vperm.xlu1 %1074, %v683_v47  }
  0x2f   : > { %561 = vmatmul.mubr.bf16.gmra.mrb[4].mxu0 %v1101_v29  ;;  %593 = vmatmul.mubr.bf16.gmra.mrb[4].mxu1 %v1102_v30 }
  0x30   : > { %568 = vmatprep.mubr.bf16.mxu0 %v1103_v33  ;;  %600 = vmatprep.mubr.bf16.mxu1 %v1105_v34 }
  0x32   : > { %756 = vperm.xlu0 %1073, %v682_v48  }
  0x37   : > { %569 = vmatmul.mubr.bf16.gmra.mrb[8].mxu0 %v1107_v37  ;;  %601 = vmatmul.mubr.bf16.gmra.mrb[8].mxu1 %v1108_v38 }
  0x38   : > { %576 = vmatprep.mubr.bf16.mxu0 %v1109_v41  ;;  %608 = vmatprep.mubr.bf16.mxu1 %v1111_v42 }
  0x3f   : > { %577 = vmatmul.mubr.bf16.gmra.mrb[12].mxu0 %v1113_v45  ;;  %609 = vmatmul.mubr.bf16.gmra.mrb[12].mxu1 %v1114_v46 }
  0x91   : > { %v697_v50 = vpop.permute.xlu1 %696 }
  0x95   : > { %v687_v49 = vpop.permute.xlu0 %686  ;;  %v702_v52 = vpop.permute.xlu1 %701 }
  0x99   : > { %v692_v51 = vpop.permute.xlu0 %691  ;;  %v1281_v54 = vpop.permute.xlu1 %711 }
  0x9d   : > { %v1279_v53 = vpop.permute.xlu0 %706  ;;  %v1286_v56 = vpop.permute.xlu1 %721 }
  0xa1   : > { %v1283_v55 = vpop.permute.xlu0 %716  ;;  %v732_v9 = vpop.permute.xlu1 %731 }
  0xa5   : > { %v727_v57 = vpop.permute.xlu0 %726  ;;  %v742_v37 = vpop.permute.xlu1 %741 }
  0xa9   : > { %v737_v14 = vpop.permute.xlu0 %736 }
  0xad   : > { %v747_v38 = vpop.permute.xlu0 %746 }
  0xfa   : > { %v984_v58 = vpop.f32.mrb[0].mxu0  ;;  %v1008_v59 = vpop.f32.mrb[0].mxu1 }
  0xfb   : > { %v985_v60 = vpop.f32.mrb[1].mxu0  ;;  %v1009_v61 = vpop.f32.mrb[1].mxu1 }
  0xfc   : > { %v986_v62 = vadd.f32 %v985_v60, %v984_v58  ;;  %v1010_v63 = vadd.f32 %v1009_v61, %v1008_v59  ;;  %v987_v0 = vpop.f32.mrb[2].mxu0  ;;  %v1011_v1 = vpop.f32.mrb[2].mxu1 }
  0xfd   : > { %v988_v3 = vpop.f32.mrb[3].mxu0  ;;  %v1012_v4 = vpop.f32.mrb[3].mxu1 }
  0xfe   : > { %v764_v5 = vmul.f32 %v986_v62, %v687_v49  ;;  %v772_v6 = vmul.f32 %v1010_v63, %v727_v57  ;;  %v989_v7 = vadd.f32 %v988_v3, %v987_v0  ;;  %v1013_v8 = vadd.f32 %v1012_v4, %v1011_v1  ;;  %v752_v4 = vpop.permute.xlu1 %751 }
 0x100   : > { %v787_v10 = vadd.f32 %v1291_v2, %v764_v5  ;;  %v795_v11 = vadd.f32 %v1291_v2, %v772_v6  ;;  %v765_v12 = vmul.f32 %v989_v7, %v692_v51  ;;  %v773_v13 = vmul.f32 %v1013_v8, %v732_v9 }
 0x102   : > { %v788_v15 = vadd.f32 %v1291_v2, %v765_v12  ;;  %v796_v16 = vadd.f32 %v1291_v2, %v773_v13  ;;  %v990_v17 = vpop.f32.mrb[4].mxu0  ;;  %v1014_v18 = vpop.f32.mrb[4].mxu1  ;;  %v803_v19 = vmax.f32 %v787_v10, 0.0  ;;  %v811_v20 = vmax.f32 %v795_v11, 0.0 }
 0x103   : > { %v991_v21 = vpop.f32.mrb[5].mxu0  ;;  %v1015_v22 = vpop.f32.mrb[5].mxu1 }
 0x104   : > { %v804_v23 = vmax.f32 %v788_v15, 0.0  ;;  %v812_v24 = vmax.f32 %v796_v16, 0.0  ;;  %v992_v25 = vadd.f32 %v991_v21, %v990_v17  ;;  %v1016_v26 = vadd.f32 %v1015_v22, %v1014_v18  ;;  %v993_v27 = vpop.f32.mrb[6].mxu0  ;;  %v1017_v28 = vpop.f32.mrb[6].mxu1 }
 0x105   : > { %v994_v29 = vpop.f32.mrb[7].mxu0  ;;  %v1018_v30 = vpop.f32.mrb[7].mxu1 }
 0x106   : > { %v819_v31 = vpack.c.bf16 %v804_v23, %v803_v19  ;;  %v823_v32 = vpack.c.bf16 %v812_v24, %v811_v20  ;;  %v766_v33 = vmul.f32 %v992_v25, %v697_v50  ;;  %v774_v34 = vmul.f32 %v1016_v26, %v737_v14  ;;  %v757_v11 = vpop.permute.xlu0 %756 }
 0x107   : > { %v995_v35 = vadd.f32 %v994_v29, %v993_v27  ;;  %v1019_v36 = vadd.f32 %v1018_v30, %v1017_v28 }
 0x108   : > { %827 = vst [vmem:[%s1300_s20] sm:$0xff] %v819_v31  ;;  %831 = vst [vmem:[%s1300_s20 + $0x20] sm:$0xff] %v823_v32  ;;  %v789_v39 = vadd.f32 %v1291_v2, %v766_v33  ;;  %v797_v40 = vadd.f32 %v1291_v2, %v774_v34  ;;  %v762_v32 = vpop.permute.xlu1 %761 }
 0x109   : > { %v767_v41 = vmul.f32 %v995_v35, %v702_v52  ;;  %v775_v42 = vmul.f32 %v1019_v36, %v742_v37 }
 0x10a   : > { %v996_v43 = vpop.f32.mrb[8].mxu0  ;;  %v1020_v44 = vpop.f32.mrb[8].mxu1  ;;  %v805_v58 = vmax.f32 %v789_v39, 0.0  ;;  %v813_v59 = vmax.f32 %v797_v40, 0.0 }
 0x10b   : > { %v790_v45 = vadd.f32 %v1291_v2, %v767_v41  ;;  %v798_v46 = vadd.f32 %v1291_v2, %v775_v42  ;;  %v997_v47 = vpop.f32.mrb[9].mxu0  ;;  %v1021_v48 = vpop.f32.mrb[9].mxu1 }
 0x10c   : > { %v998_v49 = vadd.f32 %v997_v47, %v996_v43  ;;  %v1022_v50 = vadd.f32 %v1021_v48, %v1020_v44  ;;  %v999_v51 = vpop.f32.mrb[10].mxu0  ;;  %v1023_v57 = vpop.f32.mrb[10].mxu1 }
 0x10d   : > { %v806_v60 = vmax.f32 %v790_v45, 0.0  ;;  %v814_v61 = vmax.f32 %v798_v46, 0.0  ;;  %v1000_v52 = vpop.f32.mrb[11].mxu0  ;;  %v1024_v62 = vpop.f32.mrb[11].mxu1 }
 0x10e   : > { %v768_v63 = vmul.f32 %v998_v49, %v1279_v53  ;;  %v776_v0 = vmul.f32 %v1022_v50, %v747_v38  ;;  %v1001_v1 = vadd.f32 %v1000_v52, %v999_v51  ;;  %v1025_v3 = vadd.f32 %v1024_v62, %v1023_v57 }
 0x10f   : > { %v820_v5 = vpack.c.bf16 %v806_v60, %v805_v58  ;;  %v824_v6 = vpack.c.bf16 %v814_v61, %v813_v59 }
 0x110   : > { %v791_v7 = vadd.f32 %v1291_v2, %v768_v63  ;;  %v799_v8 = vadd.f32 %v1291_v2, %v776_v0  ;;  %v769_v9 = vmul.f32 %v1001_v1, %v1281_v54  ;;  %v777_v10 = vmul.f32 %v1025_v3, %v752_v4 }
 0x111   : > { %828 = vst [vmem:[%s1300_s20 + $0x8] sm:$0xff] %v820_v5  ;;  %832 = vst [vmem:[%s1300_s20 + $0x28] sm:$0xff] %v824_v6 }
 0x112   : > { %v792_v12 = vadd.f32 %v1291_v2, %v769_v9  ;;  %v800_v53 = vadd.f32 %v1291_v2, %v777_v10  ;;  %v1002_v13 = vpop.f32.mrb[12].mxu0  ;;  %v1026_v14 = vpop.f32.mrb[12].mxu1  ;;  %v807_v15 = vmax.f32 %v791_v7, 0.0  ;;  %v815_v16 = vmax.f32 %v799_v8, 0.0 }
 0x113   : > { %v1003_v17 = vpop.f32.mrb[13].mxu0  ;;  %v1027_v18 = vpop.f32.mrb[13].mxu1 }
 0x114   : > { %v808_v19 = vmax.f32 %v792_v12, 0.0  ;;  %v816_v20 = vmax.f32 %v800_v53, 0.0  ;;  %v1004_v21 = vadd.f32 %v1003_v17, %v1002_v13  ;;  %v1028_v54 = vadd.f32 %v1027_v18, %v1026_v14  ;;  %v1005_v22 = vpop.f32.mrb[14].mxu0  ;;  %v1029_v23 = vpop.f32.mrb[14].mxu1 }
 0x115   : > { %v1006_v24 = vpop.f32.mrb[15].mxu0  ;;  %v1030_v25 = vpop.f32.mrb[15].mxu1 }
 0x116   : > { %v821_v26 = vpack.c.bf16 %v808_v19, %v807_v15  ;;  %v825_v27 = vpack.c.bf16 %v816_v20, %v815_v16  ;;  %v770_v28 = vmul.f32 %v1004_v21, %v1283_v55  ;;  %v778_v29 = vmul.f32 %v1028_v54, %v757_v11 }
 0x117   : > { %v1007_v30 = vadd.f32 %v1006_v24, %v1005_v22  ;;  %v1031_v31 = vadd.f32 %v1030_v25, %v1029_v23 }
 0x118   : > { %829 = vst [vmem:[%s1300_s20 + $0x10] sm:$0xff] %v821_v26  ;;  %833 = vst [vmem:[%s1300_s20 + $0x30] sm:$0xff] %v825_v27  ;;  %v793_v33 = vadd.f32 %v1291_v2, %v770_v28  ;;  %v801_v34 = vadd.f32 %v1291_v2, %v778_v29 }
 0x119   : > { %v771_v35 = vmul.f32 %v1007_v30, %v1286_v56  ;;  %v779_v36 = vmul.f32 %v1031_v31, %v762_v32 }
 0x11a   : > { %v809_v55 = vmax.f32 %v793_v33, 0.0  ;;  %v817_v39 = vmax.f32 %v801_v34, 0.0 }
 0x11b   : > { %v794_v37 = vadd.f32 %v1291_v2, %v771_v35  ;;  %v802_v38 = vadd.f32 %v1291_v2, %v779_v36 }
 0x11d   : > { %v810_v40 = vmax.f32 %v794_v37, 0.0  ;;  %v818_v41 = vmax.f32 %v802_v38, 0.0 }
 0x11f   : > { %v822_v42 = vpack.c.bf16 %v810_v40, %v809_v55  ;;  %v826_v43 = vpack.c.bf16 %v818_v41, %v817_v39 }
 0x121   : > { %830 = vst [vmem:[%s1300_s20 + $0x18] sm:$0xff] %v822_v42  ;;  %834 = vst [vmem:[%s1300_s20 + $0x38] sm:$0xff] %v826_v43 }
 0x122 PF: > { %s14_s17 = sadd.s32 1, %s1137_s17   ;;  %s1340_s15 = smov %s1133_s16 }
 0x123   : > { %p11_p6 = scmp.ge.s32.totalorder %s14_s17, 4   ;;  %s1341_s16 = smov %s1343_s18 }
 0x125   :  { %13 = sbr.rel (!%p11_p6) target bundleno = 2 (0x2), region = 78 }

// kernel: aegcn_forward.3
= control target key start
LH: loop header
LB: loop body
LE: loop exit
PB: predicated region body
PF: predicated region fallthrough
CT: control target
= control target key end

     0   :  { %s1149_s15 = smov 0   ;;  %s1151_s16 = smov 0   ;;  %s1328_s0 = inlined_call_operand.vmem [shape: bf16[256,256], index: 0, kind: input, shape index: {}]   ;;  %s1329_s1 = inlined_call_operand.vmem [shape: bf16[256,128], index: 1, kind: input, shape index: {}]   ;;  %s1330_s2 = inlined_call_operand.vmem [shape: f32[256,1], index: 2, kind: input, shape index: {}]   ;;  %s1331_s3 = inlined_call_operand.vmem [shape: f32[1,128], index: 3, kind: input, shape index: {}]   ;;  %s1332_s4 = inlined_call_operand.vmem [shape: f32[256,128], index: 4, kind: output, shape index: {}]  }
   0x1   :  { %s1153_s17 = smov 0  }
   0x2 LB: > { %s26_s18 = sadd.s32 1, %s1117_s16  ;;  %p908_p0 = scmp.ge.s32.totalorder %s1121_s17, 1  ;;  %s1121_s17 = sphi %s1153_s17, %s14_s17   ;;  %s1117_s16 = sphi %s1151_s16, %s1334_s16   ;;  %s1113_s15 = sphi %s1149_s15, %s1333_s15  }
   0x3   : > { %p28_p1 = scmp.ge.s32.totalorder %s26_s18, 2  ;;  %p194_p2 = scmp.lt.s32.totalorder %s1121_s17, 3 }
   0x5   : > { %s1336_s18 = smov (%p28_p1, %s26_s18), 0  ;;  %p195_p3 = pnand %p908_p0, %p194_p2 }
   0x6   : > { %v1059_v0 = vld [vmem:[%s1329_s1 + $0x40] sm:$0xff] (!%p195_p3)   ;;  %s909_s21 = sshll.u32 (!%p195_p3), %s1113_s15, 4  ;;  %v1061_v2 = vld [vmem:[%s1329_s1 + $0x48] sm:$0xff] (!%p195_p3)   ;;  %v1063_v4 = vld [vmem:[%s1329_s1 + $0x50] sm:$0xff] (!%p195_p3)   ;;  %v1123_v5 = vmov (!%p195_p3), 0  }
   0x7   : > { %198 = sbr.rel (%p195_p3) target bundleno = 285 (0x11d), region = 36  ;;  %v1060_v1 = vld [vmem:[%s1329_s1] sm:$0xff] (!%p195_p3)   ;;  %952 = vmatprep.subr.bf16.mxu0 (!%p195_p3), %v1059_v0  ;;  %1016 = vmatprep.subr.bf16.mxu1 (!%p195_p3), %v1059_v0  ;;  %v1062_v3 = vld [vmem:[%s1329_s1 + $0x8] sm:$0xff] (!%p195_p3)   ;;  %p232_p4 = scmp.lt.s32.totalorder (!%p195_p3), %s909_s21, 31  ;;  %v1064_v6 = vld [vmem:[%s1329_s1 + $0x10] sm:$0xff] (!%p195_p3)  }
   0x8   : > { %953 = vmatpush3.bf16.msra.mxu0 (!%p195_p3), %v1060_v1  ;;  %1024 = vmatpush3.bf16.msra.mxu1 (!%p195_p3), %v1060_v1  ;;  %v1065_v7 = vld [vmem:[%s1329_s1 + $0x58] sm:$0xff] (!%p195_p3)   ;;  %v1067_v9 = vld [vmem:[%s1329_s1 + $0x60] sm:$0xff] (!%p195_p3)   ;;  %v1069_v11 = vld [vmem:[%s1329_s1 + $0x68] sm:$0xff] (!%p195_p3)  }
   0x9   : > { %954 = vmatprep.subr.bf16.mxu0 (!%p195_p3), %v1061_v2  ;;  %1017 = vmatprep.subr.bf16.mxu1 (!%p195_p3), %v1061_v2  ;;  %v1066_v8 = vld [vmem:[%s1329_s1 + $0x18] sm:$0xff] (!%p195_p3)   ;;  %v1068_v10 = vld [vmem:[%s1329_s1 + $0x20] sm:$0xff] (!%p195_p3)   ;;  %v1070_v14 = vld [vmem:[%s1329_s1 + $0x28] sm:$0xff] (!%p195_p3)  }
   0xa   : > { %1058 = vset.pattern.permute.xlu1 (!%p195_p3), %v1123_v5  ;;  %1057 = vset.pattern.permute.xlu0 (!%p195_p3), %v1123_v5  ;;  %v1071_v15 = vld [vmem:[%s1329_s1 + $0x70] sm:$0xff] (!%p195_p3)   ;;  %v1073_v17 = vld [vmem:[%s1329_s1 + $0x78] sm:$0xff] (!%p195_p3)   ;;  %v1275_v2 = vld [vmem:[%s1331_s3] ss:$0 sm:$0xff] (!%p195_p3) }
   0xb   : > { %v1072_v16 = vld [vmem:[%s1329_s1 + $0x30] sm:$0xff] (!%p195_p3)   ;;  %v1074_v19 = vld [vmem:[%s1329_s1 + $0x38] sm:$0xff] (!%p195_p3)  }
   0xc   : > { %955 = vmatpush3.bf16.msra.mxu0 (!%p195_p3), %v1062_v3  ;;  %1025 = vmatpush3.bf16.msra.mxu1 (!%p195_p3), %v1062_v3 }
   0xd   : > { %956 = vmatprep.subr.bf16.mxu0 (!%p195_p3), %v1063_v4  ;;  %1018 = vmatprep.subr.bf16.mxu1 (!%p195_p3), %v1063_v4 }
   0xe   : > { %s1338_s21 = smov (!%p232_p4, %s909_s21), 31 }
   0xf   : > { %s1194_s10 = sshll.u32 %s1338_s21, 3 }
  0x10   : > { %957 = vmatpush3.bf16.msra.mxu0 %v1064_v6  ;;  %1026 = vmatpush3.bf16.msra.mxu1 %v1064_v6  ;;  %s1203_s15 = scalar_lea.vmem %s1328_s0, %s1194_s10  ;;  %s1226_s5 = scalar_lea.vmem %s1330_s2, %s1194_s10 }
  0x11   : > { %958 = vmatprep.subr.bf16.mxu0 %v1065_v7  ;;  %1019 = vmatprep.subr.bf16.mxu1 %v1065_v7  ;;  %v1077_v12 = vld [vmem:[%s1203_s15 + $0x4] ss:$8 sps:$4 sm:$0xff]   ;;  %v670_v18 = vld [vmem:[%s1226_s5 + $0x10] sm:$0xff]  ;;  %v1075_v21 = vld [vmem:[%s1203_s15] ss:$8 sps:$4 sm:$0xff]  }
  0x12   : > { %v1080_v13 = vld [vmem:[%s1203_s15 + $0x44] ss:$8 sps:$4 sm:$0xff]   ;;  %552 = vmatprep.mubr.bf16.mxu0 %v1077_v12  ;;  %696 = vperm.xlu1 %1058, %v670_v18   ;;  %v1078_v22 = vld [vmem:[%s1203_s15 + $0x40] ss:$8 sps:$4 sm:$0xff]   ;;  %v671_v23 = vld [vmem:[%s1226_s5 + $0x18] sm:$0xff] }
  0x13   : > { %584 = vmatprep.mubr.bf16.mxu1 %v1080_v13  ;;  %v668_v20 = vld [vmem:[%s1226_s5] sm:$0xff]  ;;  %v669_v24 = vld [vmem:[%s1226_s5 + $0x8] sm:$0xff]  ;;  %v1081_v25 = vld [vmem:[%s1203_s15 + $0x14] ss:$8 sps:$4 sm:$0xff]  }
  0x14   : > { %959 = vmatpush3.bf16.msra.mxu0 %v1066_v8  ;;  %1027 = vmatpush3.bf16.msra.mxu1 %v1066_v8  ;;  %v1083_v26 = vld [vmem:[%s1203_s15 + $0x54] ss:$8 sps:$4 sm:$0xff]   ;;  %v673_v27 = vld [vmem:[%s1226_s5 + $0x28] sm:$0xff]  ;;  %v672_v28 = vld [vmem:[%s1226_s5 + $0x20] sm:$0xff] }
  0x15   : > { %960 = vmatprep.subr.bf16.mxu0 %v1067_v9  ;;  %1020 = vmatprep.subr.bf16.mxu1 %v1067_v9  ;;  %v1085_v29 = vld [vmem:[%s1203_s15 + $0x10] ss:$8 sps:$4 sm:$0xff]   ;;  %v1087_v33 = vld [vmem:[%s1203_s15 + $0x24] ss:$8 sps:$4 sm:$0xff]   ;;  %v1091_v37 = vld [vmem:[%s1203_s15 + $0x20] ss:$8 sps:$4 sm:$0xff]  }
  0x16   : > { %686 = vperm.xlu0 %1057, %v668_v20   ;;  %701 = vperm.xlu1 %1058, %v671_v23   ;;  %v1086_v30 = vld [vmem:[%s1203_s15 + $0x50] ss:$8 sps:$4 sm:$0xff]   ;;  %v1089_v34 = vld [vmem:[%s1203_s15 + $0x64] ss:$8 sps:$4 sm:$0xff]   ;;  %v1092_v38 = vld [vmem:[%s1203_s15 + $0x60] ss:$8 sps:$4 sm:$0xff]  }
  0x17   : > { %v675_v31 = vld [vmem:[%s1226_s5 + $0x38] sm:$0xff]  ;;  %v674_v32 = vld [vmem:[%s1226_s5 + $0x30] sm:$0xff]  ;;  %v677_v35 = vld [vmem:[%s1226_s5 + $0x48] sm:$0xff] }
  0x18   : > { %961 = vmatpush3.bf16.msra.mxu0 %v1068_v10  ;;  %1028 = vmatpush3.bf16.msra.mxu1 %v1068_v10  ;;  %v676_v36 = vld [vmem:[%s1226_s5 + $0x40] sm:$0xff]  ;;  %v679_v39 = vld [vmem:[%s1226_s5 + $0x58] sm:$0xff]  ;;  %v678_v40 = vld [vmem:[%s1226_s5 + $0x50] sm:$0xff] }
  0x19   : > { %962 = vmatprep.subr.bf16.mxu0 %v1069_v11  ;;  %1021 = vmatprep.subr.bf16.mxu1 %v1069_v11  ;;  %v1093_v41 = vld [vmem:[%s1203_s15 + $0x34] ss:$8 sps:$4 sm:$0xff]   ;;  %v681_v43 = vld [vmem:[%s1226_s5 + $0x68] sm:$0xff]  ;;  %v680_v44 = vld [vmem:[%s1226_s5 + $0x60] sm:$0xff] }
  0x1a   : > { %691 = vperm.xlu0 %1057, %v669_v24   ;;  %711 = vperm.xlu1 %1058, %v673_v27   ;;  %v1095_v42 = vld [vmem:[%s1203_s15 + $0x74] ss:$8 sps:$4 sm:$0xff]   ;;  %v1097_v45 = vld [vmem:[%s1203_s15 + $0x30] ss:$8 sps:$4 sm:$0xff]  }
  0x1b   : > { %v1098_v46 = vld [vmem:[%s1203_s15 + $0x70] ss:$8 sps:$4 sm:$0xff]   ;;  %s1281_s15 = scalar_lea.vmem %s1332_s4, %s1194_s10 }
  0x1c   : > { %963 = vmatpush3.bf16.msra.mxu0 %v1070_v14  ;;  %1029 = vmatpush3.bf16.msra.mxu1 %v1070_v14  ;;  %v683_v47 = vld [vmem:[%s1226_s5 + $0x78] sm:$0xff]  ;;  %v682_v48 = vld [vmem:[%s1226_s5 + $0x70] sm:$0xff] }
  0x1d   : > { %964 = vmatprep.subr.bf16.mxu0 %v1071_v15  ;;  %1022 = vmatprep.subr.bf16.mxu1 %v1071_v15 }
  0x1e   : > { %706 = vperm.xlu0 %1057, %v672_v28   ;;  %721 = vperm.xlu1 %1058, %v675_v31  }
  0x20   : > { %965 = vmatpush3.bf16.msra.mxu0 %v1072_v16  ;;  %1030 = vmatpush3.bf16.msra.mxu1 %v1072_v16 }
  0x21   : > { %966 = vmatprep.subr.bf16.mxu0 %v1073_v17  ;;  %1023 = vmatprep.subr.bf16.mxu1 %v1073_v17 }
  0x22   : > { %716 = vperm.xlu0 %1057, %v674_v32   ;;  %731 = vperm.xlu1 %1058, %v677_v35  }
  0x24   : > { %967 = vmatpush3.bf16.msra.mxu0 %v1074_v19  ;;  %1031 = vmatpush3.bf16.msra.mxu1 %v1074_v19 }
  0x26   : > { %726 = vperm.xlu0 %1057, %v676_v36   ;;  %741 = vperm.xlu1 %1058, %v679_v39  }
  0x27   : > { %553 = vmatmul.mubr.bf16.vlgmr.msra.gmra.mrb[0].mxu0 %v1075_v21  ;;  %585 = vmatmul.mubr.bf16.vlgmr.msra.gmra.mrb[0].mxu1 %v1078_v22 }
  0x28   : > { %560 = vmatprep.mubr.bf16.mxu0 %v1081_v25  ;;  %592 = vmatprep.mubr.bf16.mxu1 %v1083_v26 }
  0x2a   : > { %736 = vperm.xlu0 %1057, %v678_v40   ;;  %751 = vperm.xlu1 %1058, %v681_v43  }
  0x2e   : > { %746 = vperm.xlu0 %1057, %v680_v44   ;;  %761 = vperm.xlu1 %1058, %v683_v47  }
  0x2f   : > { %561 = vmatmul.mubr.bf16.gmra.mrb[4].mxu0 %v1085_v29  ;;  %593 = vmatmul.mubr.bf16.gmra.mrb[4].mxu1 %v1086_v30 }
  0x30   : > { %568 = vmatprep.mubr.bf16.mxu0 %v1087_v33  ;;  %600 = vmatprep.mubr.bf16.mxu1 %v1089_v34 }
  0x32   : > { %756 = vperm.xlu0 %1057, %v682_v48  }
  0x37   : > { %569 = vmatmul.mubr.bf16.gmra.mrb[8].mxu0 %v1091_v37  ;;  %601 = vmatmul.mubr.bf16.gmra.mrb[8].mxu1 %v1092_v38 }
  0x38   : > { %576 = vmatprep.mubr.bf16.mxu0 %v1093_v41  ;;  %608 = vmatprep.mubr.bf16.mxu1 %v1095_v42 }
  0x3f   : > { %577 = vmatmul.mubr.bf16.gmra.mrb[12].mxu0 %v1097_v45  ;;  %609 = vmatmul.mubr.bf16.gmra.mrb[12].mxu1 %v1098_v46 }
  0x91   : > { %v697_v50 = vpop.permute.xlu1 %696 }
  0x95   : > { %v687_v49 = vpop.permute.xlu0 %686  ;;  %v702_v52 = vpop.permute.xlu1 %701 }
  0x99   : > { %v692_v51 = vpop.permute.xlu0 %691  ;;  %v1266_v54 = vpop.permute.xlu1 %711 }
  0x9d   : > { %v1264_v53 = vpop.permute.xlu0 %706  ;;  %v1270_v56 = vpop.permute.xlu1 %721 }
  0xa1   : > { %v1268_v55 = vpop.permute.xlu0 %716  ;;  %v732_v9 = vpop.permute.xlu1 %731 }
  0xa5   : > { %v727_v57 = vpop.permute.xlu0 %726  ;;  %v742_v31 = vpop.permute.xlu1 %741 }
  0xa9   : > { %v737_v14 = vpop.permute.xlu0 %736 }
  0xad   : > { %v747_v36 = vpop.permute.xlu0 %746 }
  0xfa   : > { %v968_v58 = vpop.f32.mrb[0].mxu0  ;;  %v992_v59 = vpop.f32.mrb[0].mxu1 }
  0xfb   : > { %v969_v60 = vpop.f32.mrb[1].mxu0  ;;  %v993_v61 = vpop.f32.mrb[1].mxu1 }
  0xfc   : > { %v970_v62 = vadd.f32 %v969_v60, %v968_v58  ;;  %v994_v63 = vadd.f32 %v993_v61, %v992_v59  ;;  %v971_v0 = vpop.f32.mrb[2].mxu0  ;;  %v995_v1 = vpop.f32.mrb[2].mxu1 }
  0xfd   : > { %v972_v3 = vpop.f32.mrb[3].mxu0  ;;  %v996_v4 = vpop.f32.mrb[3].mxu1 }
  0xfe   : > { %v764_v5 = vmul.f32 %v970_v62, %v687_v49  ;;  %v772_v6 = vmul.f32 %v994_v63, %v727_v57  ;;  %v973_v7 = vadd.f32 %v972_v3, %v971_v0  ;;  %v997_v8 = vadd.f32 %v996_v4, %v995_v1  ;;  %v752_v57 = vpop.permute.xlu1 %751  ;;  %v757_v62 = vpop.permute.xlu0 %756 }
 0x100   : > { %v787_v10 = vadd.f32 %v1275_v2, %v764_v5  ;;  %v795_v11 = vadd.f32 %v1275_v2, %v772_v6  ;;  %v765_v12 = vmul.f32 %v973_v7, %v692_v51  ;;  %v773_v13 = vmul.f32 %v997_v8, %v732_v9 }
 0x102   : > { %803 = vst [vmem:[%s1281_s15] sm:$0xff] %v787_v10  ;;  %811 = vst [vmem:[%s1281_s15 + $0x40] sm:$0xff] %v795_v11  ;;  %v788_v15 = vadd.f32 %v1275_v2, %v765_v12  ;;  %v796_v16 = vadd.f32 %v1275_v2, %v773_v13  ;;  %v974_v17 = vpop.f32.mrb[4].mxu0  ;;  %v998_v18 = vpop.f32.mrb[4].mxu1 }
 0x103   : > { %v975_v19 = vpop.f32.mrb[5].mxu0  ;;  %v999_v20 = vpop.f32.mrb[5].mxu1 }
 0x104   : > { %804 = vst [vmem:[%s1281_s15 + $0x8] sm:$0xff] %v788_v15  ;;  %812 = vst [vmem:[%s1281_s15 + $0x48] sm:$0xff] %v796_v16  ;;  %v976_v21 = vadd.f32 %v975_v19, %v974_v17  ;;  %v1000_v22 = vadd.f32 %v999_v20, %v998_v18  ;;  %v977_v23 = vpop.f32.mrb[6].mxu0  ;;  %v1001_v24 = vpop.f32.mrb[6].mxu1 }
 0x105   : > { %v978_v25 = vpop.f32.mrb[7].mxu0  ;;  %v1002_v26 = vpop.f32.mrb[7].mxu1 }
 0x106   : > { %v766_v27 = vmul.f32 %v976_v21, %v697_v50  ;;  %v774_v28 = vmul.f32 %v1000_v22, %v737_v14  ;;  %v979_v29 = vadd.f32 %v978_v25, %v977_v23  ;;  %v1003_v30 = vadd.f32 %v1002_v26, %v1001_v24  ;;  %v762_v14 = vpop.permute.xlu1 %761 }
 0x108   : > { %v789_v32 = vadd.f32 %v1275_v2, %v766_v27  ;;  %v797_v33 = vadd.f32 %v1275_v2, %v774_v28  ;;  %v767_v34 = vmul.f32 %v979_v29, %v702_v52  ;;  %v775_v35 = vmul.f32 %v1003_v30, %v742_v31 }
 0x10a   : > { %805 = vst [vmem:[%s1281_s15 + $0x10] sm:$0xff] %v789_v32  ;;  %813 = vst [vmem:[%s1281_s15 + $0x50] sm:$0xff] %v797_v33  ;;  %v790_v37 = vadd.f32 %v1275_v2, %v767_v34  ;;  %v798_v38 = vadd.f32 %v1275_v2, %v775_v35  ;;  %v980_v39 = vpop.f32.mrb[8].mxu0  ;;  %v1004_v40 = vpop.f32.mrb[8].mxu1 }
 0x10b   : > { %v981_v41 = vpop.f32.mrb[9].mxu0  ;;  %v1005_v42 = vpop.f32.mrb[9].mxu1 }
 0x10c   : > { %806 = vst [vmem:[%s1281_s15 + $0x18] sm:$0xff] %v790_v37  ;;  %814 = vst [vmem:[%s1281_s15 + $0x58] sm:$0xff] %v798_v38  ;;  %v982_v43 = vadd.f32 %v981_v41, %v980_v39  ;;  %v1006_v44 = vadd.f32 %v1005_v42, %v1004_v40  ;;  %v983_v45 = vpop.f32.mrb[10].mxu0  ;;  %v1007_v46 = vpop.f32.mrb[10].mxu1 }
 0x10d   : > { %v984_v47 = vpop.f32.mrb[11].mxu0  ;;  %v1008_v48 = vpop.f32.mrb[11].mxu1 }
 0x10e   : > { %v768_v49 = vmul.f32 %v982_v43, %v1264_v53  ;;  %v776_v50 = vmul.f32 %v1006_v44, %v747_v36  ;;  %v985_v51 = vadd.f32 %v984_v47, %v983_v45  ;;  %v1009_v52 = vadd.f32 %v1008_v48, %v1007_v46 }
 0x110   : > { %v791_v58 = vadd.f32 %v1275_v2, %v768_v49  ;;  %v799_v59 = vadd.f32 %v1275_v2, %v776_v50  ;;  %v769_v60 = vmul.f32 %v985_v51, %v1266_v54  ;;  %v777_v61 = vmul.f32 %v1009_v52, %v752_v57 }
 0x112   : > { %807 = vst [vmem:[%s1281_s15 + $0x20] sm:$0xff] %v791_v58  ;;  %815 = vst [vmem:[%s1281_s15 + $0x60] sm:$0xff] %v799_v59  ;;  %v792_v63 = vadd.f32 %v1275_v2, %v769_v60  ;;  %v800_v53 = vadd.f32 %v1275_v2, %v777_v61  ;;  %v986_v0 = vpop.f32.mrb[12].mxu0  ;;  %v1010_v1 = vpop.f32.mrb[12].mxu1 }
 0x113   : > { %v987_v3 = vpop.f32.mrb[13].mxu0  ;;  %v1011_v4 = vpop.f32.mrb[13].mxu1 }
 0x114   : > { %808 = vst [vmem:[%s1281_s15 + $0x28] sm:$0xff] %v792_v63  ;;  %816 = vst [vmem:[%s1281_s15 + $0x68] sm:$0xff] %v800_v53  ;;  %v988_v5 = vadd.f32 %v987_v3, %v986_v0  ;;  %v1012_v6 = vadd.f32 %v1011_v4, %v1010_v1  ;;  %v989_v7 = vpop.f32.mrb[14].mxu0  ;;  %v1013_v54 = vpop.f32.mrb[14].mxu1 }
 0x115   : > { %v990_v8 = vpop.f32.mrb[15].mxu0  ;;  %v1014_v9 = vpop.f32.mrb[15].mxu1 }
 0x116   : > { %v770_v10 = vmul.f32 %v988_v5, %v1268_v55  ;;  %v778_v11 = vmul.f32 %v1012_v6, %v757_v62  ;;  %v991_v12 = vadd.f32 %v990_v8, %v989_v7  ;;  %v1015_v13 = vadd.f32 %v1014_v9, %v1013_v54 }
 0x118   : > { %v793_v15 = vadd.f32 %v1275_v2, %v770_v10  ;;  %v801_v16 = vadd.f32 %v1275_v2, %v778_v11  ;;  %v771_v17 = vmul.f32 %v991_v12, %v1270_v56  ;;  %v779_v18 = vmul.f32 %v1015_v13, %v762_v14 }
 0x11a   : > { %809 = vst [vmem:[%s1281_s15 + $0x30] sm:$0xff] %v793_v15  ;;  %817 = vst [vmem:[%s1281_s15 + $0x70] sm:$0xff] %v801_v16  ;;  %v794_v19 = vadd.f32 %v1275_v2, %v771_v17  ;;  %v802_v20 = vadd.f32 %v1275_v2, %v779_v18 }
 0x11c   : > { %810 = vst [vmem:[%s1281_s15 + $0x38] sm:$0xff] %v794_v19  ;;  %818 = vst [vmem:[%s1281_s15 + $0x78] sm:$0xff] %v802_v20 }
 0x11d PF: > { %s14_s17 = sadd.s32 1, %s1121_s17   ;;  %s1333_s15 = smov %s1117_s16 }
 0x11e   : > { %p11_p5 = scmp.ge.s32.totalorder %s14_s17, 4   ;;  %s1334_s16 = smov %s1336_s18 }
 0x120   :  { %13 = sbr.rel (!%p11_p5) target bundleno = 2 (0x2), region = 78 }

</bundles_post_ra>
